<compile_context>
chip_gen: v7x
topology: tpu7x:2x2x1
jax: 0.10.0
libtpu: 0.0.40
codegen_flags: <defaults>
</compile_context>

<pallas_src>
import jax
import jax.numpy as jnp
from jax.experimental import pallas as pl
from jax.experimental.pallas import tpu as pltpu


def _round_up(a, b):
    return (a + b - 1) // b * b


def _leaky_relu(v, slope=0.01):
    return jnp.where(v > 0, v, slope * v)


def gnn_kernel(xw_ref, src_ref, dst_ref, eattr_ref,
               w1e_ref, b1_ref, w2r_ref, b2_ref,
               out_ref, acc_ref):
    n_blk = pl.program_id(0)          # node block ("parallel")
    e_step = pl.program_id(1)         # edge tile  ("arbitrary" reduction)
    n_pad = xw_ref.shape[1]
    te = src_ref.shape[1]
    tn = acc_ref.shape[1]

    # ---- zero this node block's accumulator at the first edge tile ----
    @pl.when(e_step == 0)
    def _():
        acc_ref[...] = jnp.zeros_like(acc_ref)

    # ---- gather projected sources: xw_t[H, N] @ src_onehot[N, TE] (MXU) ----
    # src is a [1, TE] row -> cheap sublane broadcast in the compare.
    iota_ne = jax.lax.broadcasted_iota(jnp.int32, (n_pad, te), 0)
    src_onehot = (iota_ne == src_ref[...]).astype(jnp.float32)          # [N_pad, TE]
    xjw_t = jnp.dot(xw_ref[...], src_onehot,
                    preferred_element_type=jnp.float32)                 # [H, TE]

    # ---- message (transposed): leaky_relu( xjw_t + W1e_t @ eattr_t + b1_t ) ----
    msg_t = _leaky_relu(
        xjw_t
        + jnp.dot(w1e_ref[...], eattr_ref[...],
                  preferred_element_type=jnp.float32)
        + b1_ref[...])                                                  # [H, TE]

    # ---- scatter-add into this node block: msg_t[H, TE] @ dst_onehot[TE, TN] ----
    # Edges whose dst is outside [node_base, node_base + TN) (including padded edges
    # with dst = -1) match no column and contribute exactly zero.
    node_base = n_blk * tn
    iota_en = jax.lax.broadcasted_iota(jnp.int32, (te, tn), 1) + node_base
    dst_onehot = (iota_en == dst_ref[...]).astype(jnp.float32)          # [TE, TN]
    acc_ref[...] += jnp.dot(msg_t, dst_onehot,
                            preferred_element_type=jnp.float32)

    # ---- epilogue at last edge tile: leaky_relu -> fc2 -> sigmoid (lane-dense) ----
    @pl.when(e_step == pl.num_programs(1) - 1)
    def _():
        h = _leaky_relu(acc_ref[...])                                   # [H, TN]
        logits = jnp.dot(w2r_ref[...], h,
                         preferred_element_type=jnp.float32) + b2_ref[0, 0]
        out_ref[...] = jax.nn.sigmoid(logits)                           # [1, TN]


def gnn_forward(x, edge_index, edge_attr, w1, b1, w2, b2, *,
                edge_tile=512, node_tile=1024):
    """x: [N, node_in] f32, edge_index: [2, E] int, edge_attr: [E, edge_in] f32."""
    N, node_in = x.shape
    E = edge_index.shape[1]
    hidden = w1.shape[0]
    edge_in = w1.shape[1] - node_in
    f32 = jnp.float32

    # ---- padded sizes / tiles (hidden -> sublanes, nodes/edges -> lanes) ----
    h_sub = _round_up(hidden, 8)                     # hidden in sublanes (f32 tile = 8)
    n_pad = _round_up(N, 256)                        # 256 lanes: full MXU pass on v6e/v7x
    tn = min(_round_up(node_tile, 256), n_pad)       # node block (lanes)
    n_pad = _round_up(n_pad, tn)
    e_pad = _round_up(E, 256)
    te = min(_round_up(edge_tile, 256), e_pad)
    # bound the per-step [N_pad, TE] one-hot temporary to ~8 MiB of VMEM
    te_cap = max(256, ((8 << 20) // (n_pad * 4)) // 256 * 256)
    te = min(te, te_cap)
    e_pad = _round_up(e_pad, te)

    # ---- glue: pad / re-layout parameters, indices, hoisted node projection ----
    w1_node = w1[:, :node_in].astype(f32)            # [hidden, node_in]
    w1_edge = w1[:, node_in:].astype(f32)            # [hidden, edge_in]

    # Hoisted node projection (plain XLA): xw_t[h, n] = (W1_node @ x^T)[h, n]
    xw = jnp.dot(w1_node, x.astype(f32).T)           # [hidden, N]
    xw_t = jnp.zeros((h_sub, n_pad), f32).at[:hidden, :N].set(xw)

    w1e_t = jnp.zeros((h_sub, edge_in), f32).at[:hidden, :].set(w1_edge)
    b1_t = jnp.zeros((h_sub, 1), f32).at[:hidden, 0].set(b1.astype(f32))
    w2r = jnp.zeros((1, h_sub), f32).at[0, :hidden].set(w2.reshape(-1).astype(f32))
    b2p = b2.reshape(1, 1).astype(f32)

    eattr_t = jnp.zeros((edge_in, e_pad), f32).at[:, :E].set(edge_attr.astype(f32).T)
    src_p = jnp.full((1, e_pad), -1, jnp.int32).at[0, :E].set(edge_index[0].astype(jnp.int32))
    dst_p = jnp.full((e_pad, 1), -1, jnp.int32).at[:E, 0].set(edge_index[1].astype(jnp.int32))

    # ---- shape-derived VMEM budget (capped well under v7x's 64 MiB physical) ----
    isz = 4
    vmem_need = (
        2 * h_sub * n_pad * isz                          # resident xw_t (double-buffered)
        + 2 * (h_sub * edge_in + 2 * h_sub) * isz        # small resident params
        + 2 * (2 * te + edge_in * te) * isz              # edge-tiled inputs (2 buffers)
        + 2 * tn * isz                                   # output block
        + h_sub * tn * isz                               # accumulator scratch
        + (n_pad * te + te * tn + 2 * h_sub * te) * isz  # in-kernel one-hot / msg temps
    )
    vmem_limit = int(min(max(2 * vmem_need, 16 << 20), 48 << 20))

    def resident(shape):  # constant block index -> fetched once, stays in VMEM
        return pl.BlockSpec(shape, lambda n, e: (0, 0))

    out = pl.pallas_call(
        gnn_kernel,
        out_shape=jax.ShapeDtypeStruct((1, n_pad), f32),
        grid_spec=pltpu.PrefetchScalarGridSpec(
            num_scalar_prefetch=0,
            grid=(n_pad // tn, e_pad // te),
            in_specs=[
                resident((h_sub, n_pad)),                           # xw_t (resident)
                pl.BlockSpec((1, te), lambda n, e: (0, e)),         # src row, edge-tiled
                pl.BlockSpec((te, 1), lambda n, e: (e, 0)),         # dst column, edge-tiled
                pl.BlockSpec((edge_in, te), lambda n, e: (0, e)),   # edge_attr^T (lane-dense)
                resident((h_sub, edge_in)),                         # W1 edge part^T
                resident((h_sub, 1)),                               # b1^T
                resident((1, h_sub)),                               # fc2 weight row
                pl.BlockSpec(memory_space=pltpu.MemorySpace.SMEM),  # fc2 bias (scalar)
            ],
            out_specs=pl.BlockSpec((1, tn), lambda n, e: (0, n)),   # lane-dense [1, TN]
            scratch_shapes=[
                pltpu.VMEM((h_sub, tn), f32),   # per-node-block aggregation accumulator
            ],
        ),
        compiler_params=pltpu.CompilerParams(
            dimension_semantics=("parallel", "arbitrary"),  # node blocks || , edges = reduction
            vmem_limit_bytes=vmem_limit,
        ),
    )(xw_t, src_p, dst_p, eattr_t, w1e_t, b1_t, w2r, b2p)

    return out[0, :N].reshape(N, 1)


def ref_forward(x, edge_index, edge_attr, w1, b1, w2, b2):
    """Pure-JAX reference of the PyTorch forward."""
    src, dst = edge_index[0], edge_index[1]
    x_j = x[src]
    feat = jnp.concatenate([x_j, edge_attr], axis=-1)
    msg = jax.nn.leaky_relu(feat @ w1.T + b1, 0.01)
    agg = jax.ops.segment_sum(msg, dst, num_segments=x.shape[0])
    h = jax.nn.leaky_relu(agg, 0.01)
    return jax.nn.sigmoid(h @ w2.T + b2)


if __name__ == "__main__":
    # small, module-consistent shapes
    N, E = 16, 32                 # nodes, edges
    node_in, edge_in, hidden = 8, 4, 32

    key = jax.random.PRNGKey(0)
    kx, ke, kei, kw1, kb1, kw2, kb2 = jax.random.split(key, 7)

    x = jax.random.normal(kx, (N, node_in), dtype=jnp.float32)
    edge_attr = jax.random.normal(ke, (E, edge_in), dtype=jnp.float32)
    edge_index = jax.random.randint(kei, (2, E), 0, N, dtype=jnp.int32)

    # conv1.lin : Linear(node_in + edge_in, hidden), kaiming_normal_(fan_in, leaky_relu)
    fan_in1 = node_in + edge_in
    gain_lrelu = (2.0 / (1.0 + 0.01 ** 2)) ** 0.5
    w1 = gain_lrelu / (fan_in1 ** 0.5) * jax.random.normal(kw1, (hidden, fan_in1), jnp.float32)
    b1 = (1.0 / (fan_in1 ** 0.5)) * jax.random.uniform(kb1, (hidden,), jnp.float32, -1.0, 1.0)

    # fc2 : Linear(hidden, 1), kaiming_normal_(fan_in, linear)  (gain = 1)
    w2 = (1.0 / (hidden ** 0.5)) * jax.random.normal(kw2, (1, hidden), jnp.float32)
    b2 = (1.0 / (hidden ** 0.5)) * jax.random.uniform(kb2, (1,), jnp.float32, -1.0, 1.0)

    out = gnn_forward(x, edge_index, edge_attr, w1, b1, w2, b2)
    out = jax.block_until_ready(out)

    ref = ref_forward(x, edge_index, edge_attr, w1, b1, w2, b2)
    assert out.shape == (N, 1)
    assert jnp.allclose(out, ref, atol=1e-5, rtol=1e-5), (out, ref)

    print("KERNEL_OK")
</pallas_src>

<mosaic_0001>
module attributes {stable_mosaic.version = 11 : i64} {
  func.func @gnn_kernel(%arg0: i32, %arg1: i32, %arg2: memref<32x256xf32, #tpu.memory_space<vmem>>, %arg3: memref<1x256xi32, #tpu.memory_space<vmem>>, %arg4: memref<256x1xi32, #tpu.memory_space<vmem>>, %arg5: memref<4x256xf32, #tpu.memory_space<vmem>>, %arg6: memref<32x4xf32, #tpu.memory_space<vmem>>, %arg7: memref<32x1xf32, #tpu.memory_space<vmem>>, %arg8: memref<1x32xf32, #tpu.memory_space<vmem>>, %arg9: memref<1x1xf32, #tpu.memory_space<smem>>, %arg10: memref<1x256xf32, #tpu.memory_space<vmem>>, %arg11: memref<32x256xf32, #tpu.memory_space<vmem>>) attributes {dimension_semantics = [#tpu.dimension_semantics<parallel>, #tpu.dimension_semantics<arbitrary>], iteration_bounds = array<i64: 1, 1>, scalar_prefetch = 0 : i64, scratch_operands = 1 : i64, tpu.core_type = #tpu.core_type<tc>, window_params = [{pipeline_mode = #tpu.pipeline_mode<synchronous>, transform_indices = @transform_0, window_bounds = array<i64: 32, 256>}, {transform_indices = @transform_1, window_bounds = array<i64: 1, 256>}, {transform_indices = @transform_2, window_bounds = array<i64: 256, 1>}, {transform_indices = @transform_3, window_bounds = array<i64: 4, 256>}, {pipeline_mode = #tpu.pipeline_mode<synchronous>, transform_indices = @transform_4, window_bounds = array<i64: 32, 4>}, {pipeline_mode = #tpu.pipeline_mode<synchronous>, transform_indices = @transform_5, window_bounds = array<i64: 32, 1>}, {pipeline_mode = #tpu.pipeline_mode<synchronous>, transform_indices = @transform_6, window_bounds = array<i64: 1, 32>}, {transform_indices = @transform_7, window_bounds = array<i64: 1, 1>}, {transform_indices = @transform_8, window_bounds = array<i64: 1, 256>}]} {
    %c0_i32 = arith.constant 0 : i32
    %0 = arith.cmpi eq, %arg1, %c0_i32 : i32
    %1 = arith.extui %0 : i1 to i32
    %c0_i32_0 = arith.constant 0 : i32
    %2 = arith.cmpi ne, %1, %c0_i32_0 : i32
    scf.if %2 {
      %cst_22 = arith.constant 0.000000e+00 : f32
      %39 = vector.broadcast %cst_22 : f32 to vector<32x256xf32>
      %c0_23 = arith.constant 0 : index
      %c0_24 = arith.constant 0 : index
      %40 = vector.load %arg11[%c0_23, %c0_24] : memref<32x256xf32, #tpu.memory_space<vmem>>, vector<32x256xf32>
      tpu.vector_store %arg11[%c0_23, %c0_24], %39 {strides = array<i32>} : memref<32x256xf32, #tpu.memory_space<vmem>>, vector<32x256xf32>,
    } else {
    }
    %3 = tpu.iota {dimensions = array<i32: 0>} : vector<256x256xi32>
    %c0 = arith.constant 0 : index
    %c0_1 = arith.constant 0 : index
    %4 = vector.load %arg3[%c0, %c0_1] : memref<1x256xi32, #tpu.memory_space<vmem>>, vector<1x256xi32>
    %5 = vector.broadcast %4 : vector<1x256xi32> to vector<256x256xi32>
    %6 = arith.cmpi eq, %3, %5 : vector<256x256xi32>
    %7 = arith.extui %6 : vector<256x256xi1> to vector<256x256xi32>
    %8 = arith.sitofp %7 : vector<256x256xi32> to vector<256x256xf32>
    %c0_2 = arith.constant 0 : index
    %c0_3 = arith.constant 0 : index
    %9 = vector.load %arg2[%c0_2, %c0_3] : memref<32x256xf32, #tpu.memory_space<vmem>>, vector<32x256xf32>
    %cst = arith.constant dense<0.000000e+00> : vector<32x256xf32>
    %10 = tpu.matmul %9, %8, %cst {dimension_numbers = #tpu.dot_dimension_numbers<[1], [0], [0], [1], [0, 0, 1, 1], [], []>} : vector<32x256xf32>, vector<256x256xf32>, vector<32x256xf32> -> vector<32x256xf32>
    %c0_4 = arith.constant 0 : index
    %c0_5 = arith.constant 0 : index
    %11 = vector.load %arg6[%c0_4, %c0_5] : memref<32x4xf32, #tpu.memory_space<vmem>>, vector<32x4xf32>
    %c0_6 = arith.constant 0 : index
    %c0_7 = arith.constant 0 : index
    %12 = vector.load %arg5[%c0_6, %c0_7] : memref<4x256xf32, #tpu.memory_space<vmem>>, vector<4x256xf32>
    %cst_8 = arith.constant dense<0.000000e+00> : vector<32x256xf32>
    %13 = tpu.matmul %11, %12, %cst_8 {dimension_numbers = #tpu.dot_dimension_numbers<[1], [0], [0], [1], [0, 0, 1, 1], [], []>} : vector<32x4xf32>, vector<4x256xf32>, vector<32x256xf32> -> vector<32x256xf32>
    %14 = arith.addf %10, %13 : vector<32x256xf32>
    %c0_9 = arith.constant 0 : index
    %c0_10 = arith.constant 0 : index
    %15 = vector.load %arg7[%c0_9, %c0_10] : memref<32x1xf32, #tpu.memory_space<vmem>>, vector<32x1xf32>
    %16 = vector.broadcast %15 : vector<32x1xf32> to vector<32x256xf32>
    %17 = arith.addf %14, %16 : vector<32x256xf32>
    %cst_11 = arith.constant 0.000000e+00 : f32
    %18 = vector.broadcast %cst_11 : f32 to vector<32x256xf32>
    %19 = arith.cmpf ogt, %17, %18 : vector<32x256xf32>
    %cst_12 = arith.constant 0.00999999977 : f32
    %20 = vector.broadcast %cst_12 : f32 to vector<32x256xf32>
    %21 = arith.mulf %20, %17 : vector<32x256xf32>
    %22 = arith.select %19, %17, %21 : vector<32x256xi1>, vector<32x256xf32>
    %c256_i32 = arith.constant 256 : i32
    %23 = arith.muli %arg0, %c256_i32 : i32
    %24 = tpu.iota {dimensions = array<i32: 1>} : vector<256x256xi32>
    %25 = vector.broadcast %23 : i32 to vector<256x256xi32>
    %26 = arith.addi %24, %25 : vector<256x256xi32>
    %c0_13 = arith.constant 0 : index
    %c0_14 = arith.constant 0 : index
    %27 = vector.load %arg4[%c0_13, %c0_14] : memref<256x1xi32, #tpu.memory_space<vmem>>, vector<256x1xi32>
    %28 = vector.broadcast %27 : vector<256x1xi32> to vector<256x256xi32>
    %29 = arith.cmpi eq, %26, %28 : vector<256x256xi32>
    %30 = arith.extui %29 : vector<256x256xi1> to vector<256x256xi32>
    %31 = arith.sitofp %30 : vector<256x256xi32> to vector<256x256xf32>
    %c0_15 = arith.constant 0 : index
    %c0_16 = arith.constant 0 : index
    %32 = vector.load %arg11[%c0_15, %c0_16] : memref<32x256xf32, #tpu.memory_space<vmem>>, vector<32x256xf32>
    %cst_17 = arith.constant dense<0.000000e+00> : vector<32x256xf32>
    %33 = tpu.matmul %22, %31, %cst_17 {dimension_numbers = #tpu.dot_dimension_numbers<[1], [0], [0], [1], [0, 0, 1, 1], [], []>} : vector<32x256xf32>, vector<256x256xf32>, vector<32x256xf32> -> vector<32x256xf32>
    %34 = arith.addf %32, %33 : vector<32x256xf32>
    %c0_18 = arith.constant 0 : index
    %c0_19 = arith.constant 0 : index
    %35 = vector.load %arg11[%c0_18, %c0_19] : memref<32x256xf32, #tpu.memory_space<vmem>>, vector<32x256xf32>
    tpu.vector_store %arg11[%c0_18, %c0_19], %34 {strides = array<i32>} : memref<32x256xf32, #tpu.memory_space<vmem>>, vector<32x256xf32>,
    %c0_i32_20 = arith.constant 0 : i32
    %36 = arith.cmpi eq, %arg1, %c0_i32_20 : i32
    %37 = arith.extui %36 : i1 to i32
    %c0_i32_21 = arith.constant 0 : i32
    %38 = arith.cmpi ne, %37, %c0_i32_21 : i32
    scf.if %38 {
      %c0_22 = arith.constant 0 : index
      %c0_23 = arith.constant 0 : index
      %39 = vector.load %arg11[%c0_22, %c0_23] : memref<32x256xf32, #tpu.memory_space<vmem>>, vector<32x256xf32>
      %cst_24 = arith.constant 0.000000e+00 : f32
      %40 = vector.broadcast %cst_24 : f32 to vector<32x256xf32>
      %41 = arith.cmpf ogt, %39, %40 : vector<32x256xf32>
      %cst_25 = arith.constant 0.00999999977 : f32
      %42 = vector.broadcast %cst_25 : f32 to vector<32x256xf32>
      %43 = arith.mulf %42, %39 : vector<32x256xf32>
      %44 = arith.select %41, %39, %43 : vector<32x256xi1>, vector<32x256xf32>
      %c0_26 = arith.constant 0 : index
      %c0_27 = arith.constant 0 : index
      %45 = vector.load %arg8[%c0_26, %c0_27] : memref<1x32xf32, #tpu.memory_space<vmem>>, vector<1x32xf32>
      %cst_28 = arith.constant dense<0.000000e+00> : vector<1x256xf32>
      %46 = tpu.matmul %45, %44, %cst_28 {dimension_numbers = #tpu.dot_dimension_numbers<[1], [0], [0], [1], [0, 0, 1, 1], [], []>} : vector<1x32xf32>, vector<32x256xf32>, vector<1x256xf32> -> vector<1x256xf32>
      %c0_29 = arith.constant 0 : index
      %c0_30 = arith.constant 0 : index
      %47 = memref.load %arg9[%c0_29, %c0_30] : memref<1x1xf32, #tpu.memory_space<smem>>
      %48 = vector.broadcast %47 : f32 to vector<1x256xf32>
      %49 = arith.addf %46, %48 : vector<1x256xf32>
      %50 = arith.negf %49 : vector<1x256xf32>
      %51 = math.exp %50 : vector<1x256xf32>
      %cst_31 = arith.constant 1.000000e+00 : f32
      %52 = vector.broadcast %cst_31 : f32 to vector<1x256xf32>
      %53 = arith.addf %52, %51 : vector<1x256xf32>
      %54 = arith.divf %52, %53 : vector<1x256xf32>
      %c0_32 = arith.constant 0 : index
      %c0_33 = arith.constant 0 : index
      %55 = vector.load %arg10[%c0_32, %c0_33] : memref<1x256xf32, #tpu.memory_space<vmem>>, vector<1x256xf32>
      tpu.vector_store %arg10[%c0_32, %c0_33], %54 {strides = array<i32>} : memref<1x256xf32, #tpu.memory_space<vmem>>, vector<1x256xf32>,
    } else {
    }
    return
  }
  func.func @transform_0(%arg0: i32, %arg1: i32) -> (i32, i32) {
    %c0_i32 = arith.constant 0 : i32
    %c0_i32_0 = arith.constant 0 : i32
    %c0_i32_1 = arith.constant 0 : i32
    return %c0_i32, %c0_i32_0 : i32, i32
  }
  func.func @transform_1(%arg0: i32, %arg1: i32) -> (i32, i32) {
    %c0_i32 = arith.constant 0 : i32
    %c0_i32_0 = arith.constant 0 : i32
    return %c0_i32, %arg1 : i32, i32
  }
  func.func @transform_2(%arg0: i32, %arg1: i32) -> (i32, i32) {
    %c0_i32 = arith.constant 0 : i32
    %c0_i32_0 = arith.constant 0 : i32
    return %arg1, %c0_i32 : i32, i32
  }
  func.func @transform_3(%arg0: i32, %arg1: i32) -> (i32, i32) {
    %c0_i32 = arith.constant 0 : i32
    %c0_i32_0 = arith.constant 0 : i32
    return %c0_i32, %arg1 : i32, i32
  }
  func.func @transform_4(%arg0: i32, %arg1: i32) -> (i32, i32) {
    %c0_i32 = arith.constant 0 : i32
    %c0_i32_0 = arith.constant 0 : i32
    %c0_i32_1 = arith.constant 0 : i32
    return %c0_i32, %c0_i32_0 : i32, i32
  }
  func.func @transform_5(%arg0: i32, %arg1: i32) -> (i32, i32) {
    %c0_i32 = arith.constant 0 : i32
    %c0_i32_0 = arith.constant 0 : i32
    %c0_i32_1 = arith.constant 0 : i32
    return %c0_i32, %c0_i32_0 : i32, i32
  }
  func.func @transform_6(%arg0: i32, %arg1: i32) -> (i32, i32) {
    %c0_i32 = arith.constant 0 : i32
    %c0_i32_0 = arith.constant 0 : i32
    %c0_i32_1 = arith.constant 0 : i32
    return %c0_i32, %c0_i32_0 : i32, i32
  }
  func.func @transform_7(%arg0: i32, %arg1: i32) -> (i32, i32) {
    %c0_i32 = arith.constant 0 : i32
    %c0_i32_0 = arith.constant 0 : i32
    %c0_i32_1 = arith.constant 0 : i32
    return %c0_i32, %c0_i32_0 : i32, i32
  }
  func.func @transform_8(%arg0: i32, %arg1: i32) -> (i32, i32) {
    %c0_i32 = arith.constant 0 : i32
    %c0_i32_0 = arith.constant 0 : i32
    return %c0_i32, %arg0 : i32, i32
  }
}

</mosaic_0001>

<bundles_post_ra>
// kernel: tpu_custom_call.1
= control target key start
LH: loop header
LB: loop body
LE: loop exit
PB: predicated region body
PF: predicated region fallthrough
CT: control target
= control target key end

     0   :  { %vm305_vm0 = vcmask 1043456   ;;  %v43_v1 = vlaneseq  ;;  %v1595_v3 = vmov 0.0   ;;  %vm292_vm1 = vcmask 31744   ;;  %s2068_s0 = inlined_call_operand.vmem [shape: f32[32,256], index: 0, kind: input, shape index: {}]   ;;  %s2069_s1 = inlined_call_operand.vmem [shape: s32[1,256], index: 1, kind: input, shape index: {}]   ;;  %s2070_s2 = inlined_call_operand.vmem [shape: s32[256,1], index: 2, kind: input, shape index: {}]   ;;  %s2071_s3 = inlined_call_operand.vmem [shape: f32[4,256], index: 3, kind: input, shape index: {}]   ;;  %s2072_s4 = inlined_call_operand.vmem [shape: f32[32,4], index: 4, kind: input, shape index: {}]   ;;  %s2073_s5 = inlined_call_operand.vmem [shape: f32[32,1], index: 5, kind: input, shape index: {}]   ;;  %s2074_s6 = inlined_call_operand.vmem [shape: f32[1,32], index: 6, kind: input, shape index: {}]   ;;  %s2075_s7 = inlined_call_operand.<no memory space> [shape: f32[1,1], index: 7, kind: input, shape index: {}]   ;;  %s2076_s8 = inlined_call_operand.hbm [shape: f32[1,256], index: 8, kind: output, shape index: {}]  }
   0x1   :  { %v289_v0 = vld [vmem:[%s2071_s3] sm:$0xff]  ;;  %374 = vmatprep.mubr.f32.mxu0 %v1595_v3  ;;  %v553_v5 = vld [vmem:[%s2070_s2 + $0x10] sm:$0xff]  ;;  %v1596_v8 = vmov 0   ;;  %v552_v13 = vld [vmem:[%s2070_s2 + $0x8] sm:$0xff]  ;;  %v1597_v22 = vmov 1.0|1.0  }
   0x2   :  { %v291_v2 = vcombine.high %v289_v0, %v289_v0  ;;  %v551_v4 = vld [vmem:[%s2070_s2] sm:$0xff]  ;;  %v1656_v6 = vshrl.u32 %v43_v1, 7  ;;  %1560 = vset.pattern.permute.xlu0 %v1596_v8  ;;  %1561 = vset.pattern.permute.xlu1 %v1596_v8  ;;  %v554_v16 = vld [vmem:[%s2070_s2 + $0x18] sm:$0xff]  ;;  %v286_v21 = vld [vmem:[%s2072_s4 + $0x8] sm:$0xff] }
   0x3   :  { %v285_v7 = vld [vmem:[%s2072_s4] sm:$0xff]  ;;  %584 = vperm.xlu0 %1560, %v551_v4   ;;  %590 = vperm.xlu1 %1561, %v553_v5   ;;  %v556_v26 = vld [vmem:[%s2070_s2 + $0x28] sm:$0xff]  ;;  %v557_v29 = vld [vmem:[%s2070_s2 + $0x30] sm:$0xff] }
   0x4   :  { %1210 = vmatprep.subr.msk.mxu0 %vm305_vm0, %v291_v2  ;;  %v76_v9 = vld [vmem:[%s2069_s1] sm:$0x3]  ;;  %v45_v10 = vadd.s32 8, %v1656_v6  ;;  %v79_v11 = vsub.s32 0, %v1656_v6  ;;  %v83_v12 = vsub.s32 1, %v1656_v6  ;;  %v46_v14 = vadd.s32 16, %v1656_v6 }
   0x5   :  { %1211 = vmatpush1.msk.msra.mxu0 %vm305_vm0, %v289_v0  ;;  %v47_v15 = vadd.s32 24, %v1656_v6  ;;  %v48_v19 = vadd.s32 32, %v1656_v6  ;;  %v49_v20 = vadd.s32 40, %v1656_v6  ;;  %v50_v23 = vadd.s32 48, %v1656_v6  ;;  %v555_v25 = vld [vmem:[%s2070_s2 + $0x20] sm:$0xff]  ;;  %v558_v30 = vld [vmem:[%s2070_s2 + $0x38] sm:$0xff] }
   0x6   :  { %1212 = vmatmul.mubr.msk.f32.vlgmr.msra.gmra.mrb[0].mxu0 %vm292_vm1, %v285_v7  ;;  %v1678_v17 = vrot.slane %v76_v9, %v79_v11  ;;  %v1680_v18 = vrot.slane %v76_v9, %v83_v12  ;;  %v51_v24 = vadd.s32 56, %v1656_v6  ;;  %v52_v27 = vadd.s32 64, %v1656_v6  ;;  %v287_v31 = vld [vmem:[%s2072_s4 + $0x10] sm:$0xff]  ;;  %v559_v34 = vld [vmem:[%s2070_s2 + $0x40] sm:$0xff]  ;;  %v560_v35 = vld [vmem:[%s2070_s2 + $0x48] sm:$0xff] }
   0x7   :  { %380 = vmatprep.mubr.f32.mxu0 %v1595_v3  ;;  %587 = vperm.xlu0 %1560, %v552_v13   ;;  %v53_v28 = vadd.s32 72, %v1656_v6  ;;  %v54_v32 = vadd.s32 80, %v1656_v6  ;;  %v55_v33 = vadd.s32 88, %v1656_v6  ;;  %v288_v36 = vld [vmem:[%s2072_s4 + $0x18] sm:$0xff]  ;;  %v56_v37 = vadd.s32 96, %v1656_v6  ;;  %v561_v39 = vld [vmem:[%s2070_s2 + $0x50] sm:$0xff] }
   0x8   :  { %vm86_vm2 = vcmp.eq.s32.totalorder %v1656_v6, %v1680_v18  ;;  %vm88_vm3 = vcmp.eq.s32.totalorder %v45_v10, %v1680_v18  ;;  %vm85_vm4 = vcmp.eq.s32.totalorder %v1656_v6, %v1678_v17  ;;  %vm87_vm5 = vcmp.eq.s32.totalorder %v45_v10, %v1678_v17  ;;  %593 = vperm.xlu1 %1561, %v554_v16   ;;  %v562_v40 = vld [vmem:[%s2070_s2 + $0x58] sm:$0xff]  ;;  %v278_v41 = vld [vmem:[%s2068_s0 + $0x8] sm:$0xff]  ;;  %v563_v44 = vld [vmem:[%s2070_s2 + $0x60] sm:$0xff] }
   0x9   :  { %vm1411_vm6 = vmpackc.low %vm88_vm3, %vm86_vm2  ;;  %vm90_vm7 = vcmp.eq.s32.totalorder %v46_v14, %v1680_v18  ;;  %vm92_vm8 = vcmp.eq.s32.totalorder %v47_v15, %v1680_v18  ;;  %vm89_vm9 = vcmp.eq.s32.totalorder %v46_v14, %v1678_v17  ;;  %vm91_vm10 = vcmp.eq.s32.totalorder %v47_v15, %v1678_v17  ;;  %v564_v45 = vld [vmem:[%s2070_s2 + $0x68] sm:$0xff]  ;;  %v565_v48 = vld [vmem:[%s2070_s2 + $0x70] sm:$0xff] }
   0xa   :  { %1213 = vmatmul.mubr.msk.f32.gmra.mrb[2].mxu0 %vm292_vm1, %v286_v21  ;;  %1412 = vmatprep.subr.msk.bf16.mxu0 %vm1411_vm6, %v1597_v22  ;;  %vm1413_vm11 = vmpackc.low %vm87_vm5, %vm85_vm4  ;;  %vm94_vm12 = vcmp.eq.s32.totalorder %v48_v19, %v1680_v18  ;;  %vm96_vm13 = vcmp.eq.s32.totalorder %v49_v20, %v1680_v18  ;;  %vm93_vm2 = vcmp.eq.s32.totalorder %v48_v19, %v1678_v17  ;;  %v57_v38 = vadd.s32 104, %v1656_v6  ;;  %v566_v49 = vld [vmem:[%s2070_s2 + $0x78] sm:$0xff]  ;;  %v567_v52 = vld [vmem:[%s2070_s2 + $0x80] sm:$0xff] }
   0xb   :  { %1414 = vmatpush1.bf16.msk.msra.mxu0 %vm1413_vm11, %v1597_v22  ;;  %vm1415_vm14 = vmpackc.low %vm92_vm8, %vm90_vm7  ;;  %vm95_vm3 = vcmp.eq.s32.totalorder %v49_v20, %v1678_v17  ;;  %596 = vperm.xlu0 %1560, %v555_v25   ;;  %vm98_vm4 = vcmp.eq.s32.totalorder %v50_v23, %v1680_v18  ;;  %vm100_vm5 = vcmp.eq.s32.totalorder %v51_v24, %v1680_v18  ;;  %v58_v42 = vadd.s32 112, %v1656_v6  ;;  %v568_v53 = vld [vmem:[%s2070_s2 + $0x88] sm:$0xff]  ;;  %v569_v56 = vld [vmem:[%s2070_s2 + $0x90] sm:$0xff] }
   0xc   :  { %1416 = vmatprep.subr.msk.bf16.mxu0 %vm1415_vm14, %v1597_v22  ;;  %vm1417_vm15 = vmpackc.low %vm91_vm10, %vm89_vm9  ;;  %599 = vperm.xlu1 %1561, %v556_v26   ;;  %vm97_vm8 = vcmp.eq.s32.totalorder %v50_v23, %v1678_v17  ;;  %vm99_vm9 = vcmp.eq.s32.totalorder %v51_v24, %v1678_v17  ;;  %vm102_vm10 = vcmp.eq.s32.totalorder %v52_v27, %v1680_v18  ;;  %v59_v43 = vadd.s32 120, %v1656_v6  ;;  %v570_v57 = vld [vmem:[%s2070_s2 + $0x98] sm:$0xff] }
   0xd   :  { %vm1419_vm0 = vmpackc.low %vm96_vm13, %vm94_vm12  ;;  %386 = vmatprep.mubr.f32.mxu0 %v1595_v3  ;;  %vm104_vm11 = vcmp.eq.s32.totalorder %v53_v28, %v1680_v18  ;;  %vm101_vm14 = vcmp.eq.s32.totalorder %v52_v27, %v1678_v17  ;;  %v60_v46 = vadd.s32 128, %v1656_v6  ;;  %v61_v47 = vadd.s32 136, %v1656_v6 }
   0xe   :  { %vm1421_vm6 = vmpackc.low %vm95_vm3, %vm93_vm2  ;;  %1214 = vmatmul.mubr.msk.f32.gmra.mrb[4].mxu0 %vm292_vm1, %v287_v31  ;;  %vm108_vm2 = vcmp.eq.s32.totalorder %v55_v33, %v1680_v18  ;;  %v62_v50 = vadd.s32 144, %v1656_v6  ;;  %v63_v51 = vadd.s32 152, %v1656_v6  ;;  %v64_v54 = vadd.s32 160, %v1656_v6 }
   0xf   :  { %1418 = vmatpush1.bf16.msk.msra.mxu0 %vm1417_vm15, %v1597_v22  ;;  %vm1423_vm7 = vmpackc.low %vm100_vm5, %vm98_vm4  ;;  %602 = vperm.xlu0 %1560, %v557_v29   ;;  %vm103_vm15 = vcmp.eq.s32.totalorder %v53_v28, %v1678_v17  ;;  %vm105_vm5 = vcmp.eq.s32.totalorder %v54_v32, %v1678_v17  ;;  %v65_v55 = vadd.s32 168, %v1656_v6 }
  0x10   :  { %1420 = vmatprep.subr.msk.bf16.mxu0 %vm1419_vm0, %v1597_v22  ;;  %605 = vperm.xlu1 %1561, %v558_v30   ;;  %vm1425_vm12 = vmpackc.low %vm99_vm9, %vm97_vm8  ;;  %vm106_vm0 = vcmp.eq.s32.totalorder %v54_v32, %v1680_v18  ;;  %vm112_vm8 = vcmp.eq.s32.totalorder %v57_v38, %v1680_v18 }
  0x11   :  { %392 = vmatprep.mubr.f32.mxu0 %v1595_v3  ;;  %vm1427_vm13 = vmpackc.low %vm104_vm11, %vm102_vm10  ;;  %vm109_vm10 = vcmp.eq.s32.totalorder %v56_v37, %v1678_v17  ;;  %vm111_vm11 = vcmp.eq.s32.totalorder %v57_v38, %v1678_v17 }
  0x12   :  { %vm1429_vm3 = vmpackc.low %vm103_vm15, %vm101_vm14  ;;  %1215 = vmatmul.mubr.msk.f32.gmra.mrb[6].mxu0 %vm292_vm1, %v288_v36 }
  0x13   :  { %1422 = vmatpush1.bf16.msk.msra.mxu0 %vm1421_vm6, %v1597_v22  ;;  %608 = vperm.xlu0 %1560, %v559_v34   ;;  %vm1431_vm4 = vmpackc.low %vm108_vm2, %vm106_vm0  ;;  %vm107_vm6 = vcmp.eq.s32.totalorder %v55_v33, %v1678_v17  ;;  %vm113_vm0 = vcmp.eq.s32.totalorder %v58_v42, %v1678_v17  ;;  %vm115_vm2 = vcmp.eq.s32.totalorder %v59_v43, %v1678_v17 }
  0x14   :  { %1424 = vmatprep.subr.msk.bf16.mxu0 %vm1423_vm7, %v1597_v22  ;;  %611 = vperm.xlu1 %1561, %v560_v35   ;;  %vm110_vm7 = vcmp.eq.s32.totalorder %v56_v37, %v1680_v18  ;;  %vm1433_vm1 = vmpackc.low %vm107_vm6, %vm105_vm5  ;;  %vm117_vm6 = vcmp.eq.s32.totalorder %v60_v46, %v1678_v17 }
  0x15   :  { %463 = vmatprep.mubr.f32.mxu0 %v278_v41  ;;  %vm1435_vm9 = vmpackc.low %vm112_vm8, %vm110_vm7  ;;  %vm119_vm7 = vcmp.eq.s32.totalorder %v61_v47, %v1678_v17 }
  0x16   :  { %vm1437_vm14 = vmpackc.low %vm111_vm11, %vm109_vm10 }
  0x17   :  { %1426 = vmatpush1.bf16.msk.msra.mxu0 %vm1425_vm12, %v1597_v22  ;;  %614 = vperm.xlu0 %1560, %v561_v39   ;;  %vm114_vm12 = vcmp.eq.s32.totalorder %v58_v42, %v1680_v18  ;;  %vm1441_vm5 = vmpackc.low %vm115_vm2, %vm113_vm0 }
  0x18   :  { %1428 = vmatprep.subr.msk.bf16.mxu0 %vm1427_vm13, %v1597_v22  ;;  %617 = vperm.xlu1 %1561, %v562_v40   ;;  %vm116_vm13 = vcmp.eq.s32.totalorder %v59_v43, %v1680_v18  ;;  %vm1445_vm10 = vmpackc.low %vm119_vm7, %vm117_vm6 }
  0x19   :  { %vm1439_vm15 = vmpackc.low %vm116_vm13, %vm114_vm12  ;;  %vm121_vm12 = vcmp.eq.s32.totalorder %v62_v50, %v1678_v17  ;;  %vm123_vm13 = vcmp.eq.s32.totalorder %v63_v51, %v1678_v17 }
  0x1b   :  { %1430 = vmatpush1.bf16.msk.msra.mxu0 %vm1429_vm3, %v1597_v22  ;;  %620 = vperm.xlu0 %1560, %v563_v44   ;;  %vm118_vm3 = vcmp.eq.s32.totalorder %v60_v46, %v1680_v18 }
  0x1c   :  { %1432 = vmatprep.subr.msk.bf16.mxu0 %vm1431_vm4, %v1597_v22  ;;  %623 = vperm.xlu1 %1561, %v564_v45   ;;  %vm120_vm4 = vcmp.eq.s32.totalorder %v61_v47, %v1680_v18 }
  0x1d   :  { %vm1443_vm8 = vmpackc.low %vm120_vm4, %vm118_vm3 }
  0x1f   :  { %1434 = vmatpush1.bf16.msk.msra.mxu0 %vm1433_vm1, %v1597_v22  ;;  %626 = vperm.xlu0 %1560, %v565_v48   ;;  %vm122_vm1 = vcmp.eq.s32.totalorder %v62_v50, %v1680_v18 }
  0x20   :  { %1436 = vmatprep.subr.msk.bf16.mxu0 %vm1435_vm9, %v1597_v22  ;;  %629 = vperm.xlu1 %1561, %v566_v49   ;;  %vm124_vm9 = vcmp.eq.s32.totalorder %v63_v51, %v1680_v18 }
  0x21   :  { %vm1447_vm11 = vmpackc.low %vm124_vm9, %vm122_vm1 }
  0x23   :  { %1438 = vmatpush1.bf16.msk.msra.mxu0 %vm1437_vm14, %v1597_v22  ;;  %632 = vperm.xlu0 %1560, %v567_v52  }
  0x24   :  { %1440 = vmatprep.subr.msk.bf16.mxu0 %vm1439_vm15, %v1597_v22  ;;  %635 = vperm.xlu1 %1561, %v568_v53  }
  0x27   :  { %1442 = vmatpush1.bf16.msk.msra.mxu0 %vm1441_vm5, %v1597_v22  ;;  %638 = vperm.xlu0 %1560, %v569_v56  }
  0x28   :  { %1444 = vmatprep.subr.msk.bf16.mxu0 %vm1443_vm8, %v1597_v22 }
  0x29   :  { %14 = vsyncpa [#allocation5], 0  ;;  %vm126_vm14 = vcmp.eq.s32.totalorder %v64_v54, %v1680_v18  ;;  %vm128_vm15 = vcmp.eq.s32.totalorder %v65_v55, %v1680_v18  ;;  %v66_v58 = vadd.s32 176, %v1656_v6  ;;  %v67_v59 = vadd.s32 184, %v1656_v6  ;;  %641 = vperm.xlu1 %1561, %v570_v57   ;;  %v571_v60 = vld [vmem:[%s2070_s2 + $0xa0] sm:$0xff]  ;;  %v572_v61 = vld [vmem:[%s2070_s2 + $0xa8] sm:$0xff] }
  0x2a   :  { %vm1449_vm0 = vmpackc.low %vm123_vm13, %vm121_vm12  ;;  %vm125_vm3 = vcmp.eq.s32.totalorder %v64_v54, %v1678_v17  ;;  %vm127_vm4 = vcmp.eq.s32.totalorder %v65_v55, %v1678_v17  ;;  %v68_v62 = vadd.s32 192, %v1656_v6  ;;  %v69_v63 = vadd.s32 200, %v1656_v6  ;;  %v573_v0 = vld [vmem:[%s2070_s2 + $0xb0] sm:$0xff]  ;;  %v574_v2 = vld [vmem:[%s2070_s2 + $0xb8] sm:$0xff] }
  0x2b   :  { %1446 = vmatpush1.bf16.msk.msra.mxu0 %vm1445_vm10, %v1597_v22  ;;  %vm1451_vm2 = vmpackc.low %vm128_vm15, %vm126_vm14  ;;  %644 = vperm.xlu0 %1560, %v571_v60   ;;  %vm130_vm5 = vcmp.eq.s32.totalorder %v66_v58, %v1680_v18  ;;  %vm132_vm6 = vcmp.eq.s32.totalorder %v67_v59, %v1680_v18  ;;  %vm129_vm1 = vcmp.eq.s32.totalorder %v66_v58, %v1678_v17  ;;  %v70_v4 = vadd.s32 208, %v1656_v6  ;;  %v575_v7 = vld [vmem:[%s2070_s2 + $0xc0] sm:$0xff]  ;;  %v576_v8 = vld [vmem:[%s2070_s2 + $0xc8] sm:$0xff] }
  0x2c   :  { %1448 = vmatprep.subr.msk.bf16.mxu0 %vm1447_vm11, %v1597_v22  ;;  %vm1453_vm7 = vmpackc.low %vm127_vm4, %vm125_vm3  ;;  %vm131_vm9 = vcmp.eq.s32.totalorder %v67_v59, %v1678_v17  ;;  %vm134_vm10 = vcmp.eq.s32.totalorder %v68_v62, %v1680_v18  ;;  %vm136_vm11 = vcmp.eq.s32.totalorder %v69_v63, %v1680_v18  ;;  %v71_v5 = vadd.s32 216, %v1656_v6  ;;  %v577_v11 = vld [vmem:[%s2070_s2 + $0xd0] sm:$0xff]  ;;  %v578_v12 = vld [vmem:[%s2070_s2 + $0xd8] sm:$0xff] }
  0x2d   :  { %647 = vperm.xlu1 %1561, %v572_v61   ;;  %vm1455_vm8 = vmpackc.low %vm132_vm6, %vm130_vm5  ;;  %vm133_vm14 = vcmp.eq.s32.totalorder %v68_v62, %v1678_v17  ;;  %vm135_vm15 = vcmp.eq.s32.totalorder %v69_v63, %v1678_v17  ;;  %v72_v9 = vadd.s32 224, %v1656_v6  ;;  %v73_v10 = vadd.s32 232, %v1656_v6  ;;  %v579_v15 = vld [vmem:[%s2070_s2 + $0xe0] sm:$0xff]  ;;  %v580_v16 = vld [vmem:[%s2070_s2 + $0xe8] sm:$0xff] }
  0x2e   :  { %vm1457_vm12 = vmpackc.low %vm131_vm9, %vm129_vm1  ;;  %vm137_vm5 = vcmp.eq.s32.totalorder %v70_v4, %v1678_v17  ;;  %vm139_vm6 = vcmp.eq.s32.totalorder %v71_v5, %v1678_v17  ;;  %v74_v13 = vadd.s32 240, %v1656_v6  ;;  %v75_v14 = vadd.s32 248, %v1656_v6  ;;  %v488_v19 = vld [vmem:[%s2073_s5] sm:$0xff]  ;;  %v581_v20 = vld [vmem:[%s2070_s2 + $0xf0] sm:$0xff] }
  0x2f   :  { %1450 = vmatpush1.bf16.msk.msra.mxu0 %vm1449_vm0, %v1597_v22  ;;  %650 = vperm.xlu0 %1560, %v573_v0   ;;  %vm1459_vm13 = vmpackc.low %vm136_vm11, %vm134_vm10  ;;  %vm138_vm0 = vcmp.eq.s32.totalorder %v70_v4, %v1680_v18  ;;  %vm141_vm10 = vcmp.eq.s32.totalorder %v72_v9, %v1678_v17  ;;  %vm143_vm11 = vcmp.eq.s32.totalorder %v73_v10, %v1678_v17  ;;  %v489_v21 = vld [vmem:[%s2073_s5 + $0x8] sm:$0xff]  ;;  %v277_v23 = vld [vmem:[%s2068_s0] sm:$0xff]  ;;  %v1946_v31 = vand.u32 127, %v43_v1 }
  0x30   :  { %1452 = vmatprep.subr.msk.bf16.mxu0 %vm1451_vm2, %v1597_v22  ;;  %vm140_vm2 = vcmp.eq.s32.totalorder %v71_v5, %v1680_v18  ;;  %vm1461_vm3 = vmpackc.low %vm135_vm15, %vm133_vm14  ;;  %v491_v24 = vld [vmem:[%s2073_s5 + $0x18] sm:$0xff]  ;;  %v279_v26 = vld [vmem:[%s2068_s0 + $0x10] sm:$0xff] }
  0x31   :  { %653 = vperm.xlu1 %1561, %v574_v2   ;;  %vm1463_vm4 = vmpackc.low %vm140_vm2, %vm138_vm0  ;;  %vm145_vm0 = vcmp.eq.s32.totalorder %v74_v13, %v1678_v17  ;;  %vm147_vm2 = vcmp.eq.s32.totalorder %v75_v14, %v1678_v17  ;;  %v490_v17 = vld [vmem:[%s2073_s5 + $0x10] sm:$0xff]  ;;  %v280_v25 = vld [vmem:[%s2068_s0 + $0x18] sm:$0xff]  ;;  %v1949_v32 = vadd.s32 128, %v1946_v31 }
  0x32   :  { %vm1465_vm1 = vmpackc.low %vm139_vm6, %vm137_vm5  ;;  %v282_v27 = vld [vmem:[%s2068_s0 + $0x28] sm:$0xff]  ;;  %v281_v28 = vld [vmem:[%s2068_s0 + $0x20] sm:$0xff] }
  0x33   :  { %1454 = vmatpush1.bf16.msk.msra.mxu0 %vm1453_vm7, %v1597_v22  ;;  %656 = vperm.xlu0 %1560, %v575_v7   ;;  %vm142_vm7 = vcmp.eq.s32.totalorder %v72_v9, %v1680_v18  ;;  %vm1469_vm14 = vmpackc.low %vm143_vm11, %vm141_vm10  ;;  %v284_v29 = vld [vmem:[%s2068_s0 + $0x38] sm:$0xff]  ;;  %v283_v30 = vld [vmem:[%s2068_s0 + $0x30] sm:$0xff] }
  0x34   :  { %1456 = vmatprep.subr.msk.bf16.mxu0 %vm1455_vm8, %v1597_v22  ;;  %vm144_vm8 = vcmp.eq.s32.totalorder %v73_v10, %v1680_v18 }
  0x35   :  { %659 = vperm.xlu1 %1561, %v576_v8   ;;  %vm1467_vm9 = vmpackc.low %vm144_vm8, %vm142_vm7 }
  0x37   :  { %1458 = vmatpush1.bf16.msk.msra.mxu0 %vm1457_vm12, %v1597_v22  ;;  %662 = vperm.xlu0 %1560, %v577_v11   ;;  %vm146_vm12 = vcmp.eq.s32.totalorder %v74_v13, %v1680_v18 }
  0x38   :  { %1460 = vmatprep.subr.msk.bf16.mxu0 %vm1459_vm13, %v1597_v22  ;;  %vm148_vm13 = vcmp.eq.s32.totalorder %v75_v14, %v1680_v18  ;;  %v582_v18 = vld [vmem:[%s2070_s2 + $0xf8] sm:$0xff] }
  0x39   :  { %665 = vperm.xlu1 %1561, %v578_v12   ;;  %vm1471_vm15 = vmpackc.low %vm148_vm13, %vm146_vm12 }
  0x3b   :  { %1462 = vmatpush1.bf16.msk.msra.mxu0 %vm1461_vm3, %v1597_v22  ;;  %668 = vperm.xlu0 %1560, %v579_v15   ;;  %vm1473_vm3 = vmpackc.low %vm147_vm2, %vm145_vm0 }
  0x3c   :  { %1464 = vmatprep.subr.msk.bf16.mxu0 %vm1463_vm4, %v1597_v22 }
  0x3d   :  { %671 = vperm.xlu1 %1561, %v580_v16  }
  0x3f   :  { %1466 = vmatpush1.bf16.msk.msra.mxu0 %vm1465_vm1, %v1597_v22  ;;  %494 = vperm.xlu0 %1560, %v488_v19  }
  0x40   :  { %1468 = vmatprep.subr.msk.bf16.mxu0 %vm1467_vm9, %v1597_v22 }
  0x41   :  { %674 = vperm.xlu1 %1561, %v581_v20  }
  0x43   :  { %1470 = vmatpush1.bf16.msk.msra.mxu0 %vm1469_vm14, %v1597_v22  ;;  %677 = vperm.xlu0 %1560, %v582_v18  }
  0x44   :  { %1472 = vmatprep.subr.msk.bf16.mxu0 %vm1471_vm15, %v1597_v22 }
  0x45   :  { %499 = vperm.xlu1 %1561, %v489_v21  }
  0x47   :  { %1474 = vmatpush1.bf16.msk.msra.mxu0 %vm1473_vm3, %v1597_v22  ;;  %504 = vperm.xlu0 %1560, %v490_v17  }
  0x49   :  { %509 = vperm.xlu1 %1561, %v491_v24  }
  0x4a   :  { %464 = vmatmul.mubr.f32.vlgmr.msra.gmra.mrb[0].mxu0 %v277_v23 }
  0x4b   :  { %469 = vmatprep.mubr.f32.mxu0 %v280_v25 }
  0x4e   :  { %470 = vmatmul.mubr.f32.gmra.mrb[2].mxu0 %v279_v26 }
  0x4f   :  { %475 = vmatprep.mubr.f32.mxu0 %v282_v27 }
  0x52   :  { %476 = vmatmul.mubr.f32.gmra.mrb[4].mxu0 %v281_v28 }
  0x53   :  { %481 = vmatprep.mubr.f32.mxu0 %v284_v29 }
  0x56   :  { %482 = vmatmul.mubr.f32.gmra.mrb[6].mxu0 %v283_v30 }
  0x82   :  { %v585_v33 = vpop.permute.xlu0 %584  ;;  %v591_v34 = vpop.permute.xlu1 %590 }
  0x83   :  { %vm680_vm4 = vcmp.eq.s32.totalorder %v1949_v32, %v585_v33  ;;  %vm684_vm5 = vcmp.eq.s32.totalorder %v1949_v32, %v591_v34  ;;  %vm679_vm7 = vcmp.eq.s32.totalorder %v1946_v31, %v585_v33  ;;  %vm683_vm10 = vcmp.eq.s32.totalorder %v1946_v31, %v591_v34 }
  0x86   :  { %v588_v35 = vpop.permute.xlu0 %587 }
  0x87   :  { %v594_v36 = vpop.permute.xlu1 %593  ;;  %vm682_vm6 = vcmp.eq.s32.totalorder %v1949_v32, %v588_v35  ;;  %vm681_vm8 = vcmp.eq.s32.totalorder %v1946_v31, %v588_v35 }
  0x88   :  { %vm686_vm1 = vcmp.eq.s32.totalorder %v1949_v32, %v594_v36  ;;  %vm1475_vm9 = vmpackc.low %vm682_vm6, %vm680_vm4  ;;  %vm685_vm11 = vcmp.eq.s32.totalorder %v1946_v31, %v594_v36 }
  0x89   :  { %1476 = vmatprep.subr.msk.bf16.mxu1 %vm1475_vm9, %v1597_v22  ;;  %vm1479_vm12 = vmpackc.low %vm686_vm1, %vm684_vm5 }
  0x8a   :  { %vm1477_vm13 = vmpackc.low %vm681_vm8, %vm679_vm7  ;;  %v597_v37 = vpop.permute.xlu0 %596 }
  0x8b   :  { %1478 = vmatpush1.bf16.msk.msra.mxu1 %vm1477_vm13, %v1597_v22  ;;  %vm1481_vm14 = vmpackc.low %vm685_vm11, %vm683_vm10  ;;  %vm688_vm15 = vcmp.eq.s32.totalorder %v1949_v32, %v597_v37  ;;  %v600_v38 = vpop.permute.xlu1 %599  ;;  %vm687_vm0 = vcmp.eq.s32.totalorder %v1946_v31, %v597_v37 }
  0x8c   :  { %1480 = vmatprep.subr.msk.bf16.mxu1 %vm1479_vm12, %v1597_v22  ;;  %vm689_vm2 = vcmp.eq.s32.totalorder %v1946_v31, %v600_v38  ;;  %vm690_vm3 = vcmp.eq.s32.totalorder %v1949_v32, %v600_v38 }
  0x8d   :  { %vm1483_vm4 = vmpackc.low %vm690_vm3, %vm688_vm15 }
  0x8e   :  { %v603_v39 = vpop.permute.xlu0 %602  ;;  %vm1485_vm5 = vmpackc.low %vm689_vm2, %vm687_vm0 }
  0x8f   :  { %1482 = vmatpush1.bf16.msk.msra.mxu1 %vm1481_vm14, %v1597_v22  ;;  %vm692_vm6 = vcmp.eq.s32.totalorder %v1949_v32, %v603_v39  ;;  %v606_v40 = vpop.permute.xlu1 %605  ;;  %vm691_vm7 = vcmp.eq.s32.totalorder %v1946_v31, %v603_v39 }
  0x90   :  { %1484 = vmatprep.subr.msk.bf16.mxu1 %vm1483_vm4, %v1597_v22  ;;  %vm693_vm8 = vcmp.eq.s32.totalorder %v1946_v31, %v606_v40  ;;  %vm694_vm1 = vcmp.eq.s32.totalorder %v1949_v32, %v606_v40 }
  0x91   :  { %vm1487_vm9 = vmpackc.low %vm694_vm1, %vm692_vm6 }
  0x92   :  { %v609_v41 = vpop.permute.xlu0 %608  ;;  %vm1489_vm10 = vmpackc.low %vm693_vm8, %vm691_vm7 }
  0x93   :  { %1486 = vmatpush1.bf16.msk.msra.mxu1 %vm1485_vm5, %v1597_v22  ;;  %vm696_vm11 = vcmp.eq.s32.totalorder %v1949_v32, %v609_v41  ;;  %v612_v42 = vpop.permute.xlu1 %611  ;;  %vm695_vm12 = vcmp.eq.s32.totalorder %v1946_v31, %v609_v41 }
  0x94   :  { %1488 = vmatprep.subr.msk.bf16.mxu1 %vm1487_vm9, %v1597_v22  ;;  %vm697_vm13 = vcmp.eq.s32.totalorder %v1946_v31, %v612_v42  ;;  %vm698_vm14 = vcmp.eq.s32.totalorder %v1949_v32, %v612_v42 }
  0x95   :  { %vm1491_vm15 = vmpackc.low %vm698_vm14, %vm696_vm11 }
  0x96   :  { %v615_v43 = vpop.permute.xlu0 %614  ;;  %vm1493_vm0 = vmpackc.low %vm697_vm13, %vm695_vm12 }
  0x97   :  { %1490 = vmatpush1.bf16.msk.msra.mxu1 %vm1489_vm10, %v1597_v22  ;;  %vm700_vm2 = vcmp.eq.s32.totalorder %v1949_v32, %v615_v43  ;;  %v618_v44 = vpop.permute.xlu1 %617  ;;  %vm699_vm3 = vcmp.eq.s32.totalorder %v1946_v31, %v615_v43 }
  0x98   :  { %1492 = vmatprep.subr.msk.bf16.mxu1 %vm1491_vm15, %v1597_v22  ;;  %vm701_vm4 = vcmp.eq.s32.totalorder %v1946_v31, %v618_v44  ;;  %vm702_vm5 = vcmp.eq.s32.totalorder %v1949_v32, %v618_v44 }
  0x99   :  { %vm1495_vm6 = vmpackc.low %vm702_vm5, %vm700_vm2 }
  0x9a   :  { %v621_v45 = vpop.permute.xlu0 %620  ;;  %vm1497_vm7 = vmpackc.low %vm701_vm4, %vm699_vm3 }
  0x9b   :  { %1494 = vmatpush1.bf16.msk.msra.mxu1 %vm1493_vm0, %v1597_v22  ;;  %vm704_vm8 = vcmp.eq.s32.totalorder %v1949_v32, %v621_v45  ;;  %v624_v46 = vpop.permute.xlu1 %623  ;;  %vm703_vm1 = vcmp.eq.s32.totalorder %v1946_v31, %v621_v45 }
  0x9c   :  { %1496 = vmatprep.subr.msk.bf16.mxu1 %vm1495_vm6, %v1597_v22  ;;  %vm705_vm9 = vcmp.eq.s32.totalorder %v1946_v31, %v624_v46  ;;  %vm706_vm10 = vcmp.eq.s32.totalorder %v1949_v32, %v624_v46 }
  0x9d   :  { %vm1499_vm11 = vmpackc.low %vm706_vm10, %vm704_vm8 }
  0x9e   :  { %v627_v47 = vpop.permute.xlu0 %626  ;;  %vm1501_vm12 = vmpackc.low %vm705_vm9, %vm703_vm1 }
  0x9f   :  { %1498 = vmatpush1.bf16.msk.msra.mxu1 %vm1497_vm7, %v1597_v22  ;;  %vm708_vm13 = vcmp.eq.s32.totalorder %v1949_v32, %v627_v47  ;;  %v630_v48 = vpop.permute.xlu1 %629  ;;  %vm707_vm14 = vcmp.eq.s32.totalorder %v1946_v31, %v627_v47 }
  0xa0   :  { %1500 = vmatprep.subr.msk.bf16.mxu1 %vm1499_vm11, %v1597_v22  ;;  %vm709_vm15 = vcmp.eq.s32.totalorder %v1946_v31, %v630_v48  ;;  %vm710_vm0 = vcmp.eq.s32.totalorder %v1949_v32, %v630_v48 }
  0xa1   :  { %vm1503_vm2 = vmpackc.low %vm710_vm0, %vm708_vm13 }
  0xa2   :  { %v633_v49 = vpop.permute.xlu0 %632  ;;  %vm1505_vm3 = vmpackc.low %vm709_vm15, %vm707_vm14 }
  0xa3   :  { %1502 = vmatpush1.bf16.msk.msra.mxu1 %vm1501_vm12, %v1597_v22  ;;  %vm712_vm4 = vcmp.eq.s32.totalorder %v1949_v32, %v633_v49  ;;  %v636_v50 = vpop.permute.xlu1 %635  ;;  %vm711_vm5 = vcmp.eq.s32.totalorder %v1946_v31, %v633_v49 }
  0xa4   :  { %1504 = vmatprep.subr.msk.bf16.mxu1 %vm1503_vm2, %v1597_v22  ;;  %vm713_vm6 = vcmp.eq.s32.totalorder %v1946_v31, %v636_v50  ;;  %vm714_vm7 = vcmp.eq.s32.totalorder %v1949_v32, %v636_v50 }
  0xa5   :  { %vm1507_vm8 = vmpackc.low %vm714_vm7, %vm712_vm4 }
  0xa6   :  { %v639_v51 = vpop.permute.xlu0 %638  ;;  %vm1509_vm1 = vmpackc.low %vm713_vm6, %vm711_vm5 }
  0xa7   :  { %1506 = vmatpush1.bf16.msk.msra.mxu1 %vm1505_vm3, %v1597_v22  ;;  %vm716_vm9 = vcmp.eq.s32.totalorder %v1949_v32, %v639_v51  ;;  %vm715_vm10 = vcmp.eq.s32.totalorder %v1946_v31, %v639_v51 }
  0xa8   :  { %v642_v52 = vpop.permute.xlu1 %641  ;;  %1508 = vmatprep.subr.msk.bf16.mxu1 %vm1507_vm8, %v1597_v22 }
  0xa9   :  { %vm717_vm11 = vcmp.eq.s32.totalorder %v1946_v31, %v642_v52  ;;  %vm718_vm12 = vcmp.eq.s32.totalorder %v1949_v32, %v642_v52 }
  0xaa   :  { %vm1511_vm13 = vmpackc.low %vm718_vm12, %vm716_vm9  ;;  %v645_v53 = vpop.permute.xlu0 %644 }
  0xab   :  { %1510 = vmatpush1.bf16.msk.msra.mxu1 %vm1509_vm1, %v1597_v22  ;;  %vm1513_vm14 = vmpackc.low %vm717_vm11, %vm715_vm10  ;;  %vm720_vm15 = vcmp.eq.s32.totalorder %v1949_v32, %v645_v53  ;;  %vm719_vm0 = vcmp.eq.s32.totalorder %v1946_v31, %v645_v53 }
  0xac   :  { %v648_v54 = vpop.permute.xlu1 %647  ;;  %1512 = vmatprep.subr.msk.bf16.mxu1 %vm1511_vm13, %v1597_v22 }
  0xad   :  { %vm721_vm2 = vcmp.eq.s32.totalorder %v1946_v31, %v648_v54  ;;  %vm722_vm3 = vcmp.eq.s32.totalorder %v1949_v32, %v648_v54 }
  0xae   :  { %vm1515_vm4 = vmpackc.low %vm722_vm3, %vm720_vm15  ;;  %v651_v55 = vpop.permute.xlu0 %650 }
  0xaf   :  { %1514 = vmatpush1.bf16.msk.msra.mxu1 %vm1513_vm14, %v1597_v22  ;;  %vm1517_vm5 = vmpackc.low %vm721_vm2, %vm719_vm0  ;;  %vm724_vm6 = vcmp.eq.s32.totalorder %v1949_v32, %v651_v55  ;;  %vm723_vm7 = vcmp.eq.s32.totalorder %v1946_v31, %v651_v55 }
  0xb0   :  { %v654_v56 = vpop.permute.xlu1 %653  ;;  %1516 = vmatprep.subr.msk.bf16.mxu1 %vm1515_vm4, %v1597_v22 }
  0xb1   :  { %vm725_vm8 = vcmp.eq.s32.totalorder %v1946_v31, %v654_v56  ;;  %vm726_vm1 = vcmp.eq.s32.totalorder %v1949_v32, %v654_v56 }
  0xb2   :  { %vm1519_vm9 = vmpackc.low %vm726_vm1, %vm724_vm6  ;;  %v657_v57 = vpop.permute.xlu0 %656 }
  0xb3   :  { %1518 = vmatpush1.bf16.msk.msra.mxu1 %vm1517_vm5, %v1597_v22  ;;  %vm1521_vm10 = vmpackc.low %vm725_vm8, %vm723_vm7  ;;  %vm728_vm11 = vcmp.eq.s32.totalorder %v1949_v32, %v657_v57  ;;  %vm727_vm12 = vcmp.eq.s32.totalorder %v1946_v31, %v657_v57 }
  0xb4   :  { %v660_v58 = vpop.permute.xlu1 %659  ;;  %1520 = vmatprep.subr.msk.bf16.mxu1 %vm1519_vm9, %v1597_v22 }
  0xb5   :  { %vm729_vm13 = vcmp.eq.s32.totalorder %v1946_v31, %v660_v58  ;;  %vm730_vm14 = vcmp.eq.s32.totalorder %v1949_v32, %v660_v58 }
  0xb6   :  { %vm1523_vm15 = vmpackc.low %vm730_vm14, %vm728_vm11  ;;  %v663_v59 = vpop.permute.xlu0 %662 }
  0xb7   :  { %1522 = vmatpush1.bf16.msk.msra.mxu1 %vm1521_vm10, %v1597_v22  ;;  %vm1525_vm0 = vmpackc.low %vm729_vm13, %vm727_vm12  ;;  %vm732_vm2 = vcmp.eq.s32.totalorder %v1949_v32, %v663_v59  ;;  %vm731_vm3 = vcmp.eq.s32.totalorder %v1946_v31, %v663_v59 }
  0xb8   :  { %v666_v60 = vpop.permute.xlu1 %665  ;;  %1524 = vmatprep.subr.msk.bf16.mxu1 %vm1523_vm15, %v1597_v22 }
  0xb9   :  { %vm733_vm4 = vcmp.eq.s32.totalorder %v1946_v31, %v666_v60  ;;  %vm734_vm5 = vcmp.eq.s32.totalorder %v1949_v32, %v666_v60 }
  0xba   :  { %vm1527_vm6 = vmpackc.low %vm734_vm5, %vm732_vm2  ;;  %v669_v61 = vpop.permute.xlu0 %668 }
  0xbb   :  { %1526 = vmatpush1.bf16.msk.msra.mxu1 %vm1525_vm0, %v1597_v22  ;;  %vm1529_vm7 = vmpackc.low %vm733_vm4, %vm731_vm3  ;;  %vm736_vm8 = vcmp.eq.s32.totalorder %v1949_v32, %v669_v61  ;;  %vm735_vm1 = vcmp.eq.s32.totalorder %v1946_v31, %v669_v61 }
  0xbc   :  { %v672_v62 = vpop.permute.xlu1 %671  ;;  %1528 = vmatprep.subr.msk.bf16.mxu1 %vm1527_vm6, %v1597_v22 }
  0xbd   :  { %vm737_vm9 = vcmp.eq.s32.totalorder %v1946_v31, %v672_v62  ;;  %vm738_vm10 = vcmp.eq.s32.totalorder %v1949_v32, %v672_v62 }
  0xbe   :  { %vm1531_vm11 = vmpackc.low %vm738_vm10, %vm736_vm8  ;;  %v495_v63 = vpop.permute.xlu0 %494 }
  0xbf   :  { %1530 = vmatpush1.bf16.msk.msra.mxu1 %vm1529_vm7, %v1597_v22  ;;  %vm1533_vm12 = vmpackc.low %vm737_vm9, %vm735_vm1 }
  0xc0   :  { %1532 = vmatprep.subr.msk.bf16.mxu1 %vm1531_vm11, %v1597_v22  ;;  %v675_v0 = vpop.permute.xlu1 %674 }
  0xc1   :  { %vm740_vm13 = vcmp.eq.s32.totalorder %v1949_v32, %v675_v0  ;;  %vm739_vm14 = vcmp.eq.s32.totalorder %v1946_v31, %v675_v0 }
  0xc2   :  { %v678_v2 = vpop.permute.xlu0 %677 }
  0xc3   :  { %1534 = vmatpush1.bf16.msk.msra.mxu1 %vm1533_vm12, %v1597_v22  ;;  %vm741_vm15 = vcmp.eq.s32.totalorder %v1946_v31, %v678_v2  ;;  %vm742_vm0 = vcmp.eq.s32.totalorder %v1949_v32, %v678_v2 }
  0xc4   :  { %vm1535_vm2 = vmpackc.low %vm742_vm0, %vm740_vm13  ;;  %v500_v10 = vpop.permute.xlu1 %499 }
  0xc5   :  { %vm1537_vm3 = vmpackc.low %vm741_vm15, %vm739_vm14  ;;  %1536 = vmatprep.subr.msk.bf16.mxu1 %vm1535_vm2, %v1597_v22 }
  0xc6   :  { %v505_v18 = vpop.permute.xlu0 %504 }
  0xc7   :  { %1538 = vmatpush1.bf16.msk.msra.mxu1 %vm1537_vm3, %v1597_v22 }
  0xc8   :  { %v510_v28 = vpop.permute.xlu1 %509 }
 0x11d   :  { %v465_v4 = vpop.f32.mrb[0].mxu0 }
 0x11e   :  { %v512_v5 = vadd.f32 %v495_v63, %v465_v4  ;;  %v467_v7 = vpop.f32.mrb[1].mxu0 }
 0x11f   :  { %v513_v8 = vadd.f32 %v495_v63, %v467_v7  ;;  %v1021_v7 = vstv %s2075_s7 }
 0x120   :  { %v528_v9 = vmul.f32 0.01, %v512_v5  ;;  %vm520_vm5 = vcmp.gt.f32.partialorder %v512_v5, 0.0 }
 0x121   :  { %v471_v11 = vpop.f32.mrb[2].mxu0  ;;  %vm521_vm4 = vcmp.gt.f32.partialorder %v513_v8, 0.0  ;;  %v529_v12 = vmul.f32 0.01, %v513_v8 }
 0x122   :  { %v514_v13 = vadd.f32 %v500_v10, %v471_v11  ;;  %v473_v14 = vpop.f32.mrb[3].mxu0  ;;  %v536_v20 = vsel %vm520_vm5, %v512_v5, %v528_v9  ;;  %v1019_v5 = vld [vmem:[%s2074_s6] sm:$0x1]  ;;  %s1599_s6 = smov [#allocation4]   ;;  %vm1129_vm5 = vcmp.lt.s32.totalorder %v43_v1, 256 }
 0x123   :  { %v515_v15 = vadd.f32 %v500_v10, %v473_v14  ;;  %v537_v16 = vsel %vm521_vm4, %v513_v8, %v529_v12  ;;  %vm1022_vm4 = vcmask 261120   ;;  %s1138_s7 = sshll.u32 %s1599_s6, 4  ;;  %s1139_s7 = int_to_ptr.vmem [resolvable:$true] %s1138_s7 }
 0x124   :  { %v530_v19 = vmul.f32 0.01, %v514_v13  ;;  %943 = vmatprep.mubr.f32.mxu1 %v537_v16  ;;  %vm522_vm7 = vcmp.gt.f32.partialorder %v514_v13, 0.0  ;;  %s1571_s29 = scalar_lea.vmem %s1139_s7, 32  ;;  %p1576_p1 = scmp.lt.s32.totalorder %s1139_s7, %s1139_s7 }
 0x125   :  { %v531_v21 = vmul.f32 0.01, %v515_v15  ;;  %v477_v22 = vpop.f32.mrb[4].mxu0  ;;  %944 = vmatmul.mubr.f32.vlgmr.msra.gmra.mrb[0].mxu1 %v536_v20  ;;  %vm523_vm6 = vcmp.gt.f32.partialorder %v515_v15, 0.0  ;;  %v1598_v20 = vmov 1966171168   ;;  %p1572_p0 = scmp.ne.s32.totalorder %s1139_s7, %s1571_s29  ;;  %p1577_p2 = scmp.lt.s32.totalorder %s1571_s29, %s1571_s29 }
 0x126   :  { %v516_v17 = vadd.f32 %v505_v18, %v477_v22  ;;  %v479_v23 = vpop.f32.mrb[5].mxu0  ;;  %v538_v27 = vsel %vm522_vm7, %v514_v13, %v530_v19 }
 0x127   :  { %v517_v24 = vadd.f32 %v505_v18, %v479_v23  ;;  %v539_v25 = vsel %vm523_vm6, %v515_v15, %v531_v21  ;;  %v1113_v18 = vunpack.c.l.s4 %v1598_v20  ;;  %p1578_p3 = por %p1577_p2, %p1576_p1 }
 0x128   :  { %v532_v26 = vmul.f32 0.01, %v516_v17  ;;  %949 = vmatprep.mubr.f32.mxu1 %v539_v25  ;;  %vm524_vm1 = vcmp.gt.f32.partialorder %v516_v17, 0.0 }
 0x129   :  { %v533_v29 = vmul.f32 0.01, %v517_v24  ;;  %v483_v30 = vpop.f32.mrb[6].mxu0  ;;  %950 = vmatmul.mubr.f32.gmra.mrb[2].mxu1 %v538_v27  ;;  %vm525_vm8 = vcmp.gt.f32.partialorder %v517_v24, 0.0  ;;  %v1114_v21 = vunpack.c.0.s8 %v1113_v18  ;;  %p1579_p4 = pnand %p1578_p3, %p1572_p0 }
 0x12a   :  { %v518_v31 = vadd.f32 %v510_v28, %v483_v30  ;;  %v485_v32 = vpop.f32.mrb[7].mxu0  ;;  %v540_v36 = vsel %vm524_vm1, %v516_v17, %v532_v26 }
 0x12b   :  { %v519_v33 = vadd.f32 %v510_v28, %v485_v32  ;;  %v541_v34 = vsel %vm525_vm8, %v517_v24, %v533_v29  ;;  %v1117_v17 = vsub.s32 %v1114_v21, %v1656_v6 }
 0x12c   :  { %v534_v35 = vmul.f32 0.01, %v518_v31  ;;  %955 = vmatprep.mubr.f32.mxu1 %v541_v34  ;;  %vm526_vm10 = vcmp.gt.f32.partialorder %v518_v31, 0.0 }
 0x12d   :  { %v535_v37 = vmul.f32 0.01, %v519_v33  ;;  %956 = vmatmul.mubr.f32.gmra.mrb[4].mxu1 %v540_v36  ;;  %vm527_vm9 = vcmp.gt.f32.partialorder %v519_v33, 0.0 }
 0x12e   :  { %v542_v39 = vsel %vm526_vm10, %v518_v31, %v534_v35 }
 0x12f   :  { %v543_v38 = vsel %vm527_vm9, %v519_v33, %v535_v37 }
 0x130   :  { %961 = vmatprep.mubr.f32.mxu1 %v543_v38 }
 0x131   :  { %962 = vmatmul.mubr.f32.gmra.mrb[6].mxu1 %v542_v39 }
 0x132   :  { %1090 = vmatprep.mubr.f32.mxu1 %v1595_v3 }
 0x1f8   :  { %v945_v40 = vpop.f32.mrb[0].mxu1 }
 0x1f9   :  { %v947_v41 = vpop.f32.mrb[1].mxu1  ;;  %v1003_v42 = vmul.f32 0.01, %v945_v40  ;;  %vm995_vm11 = vcmp.gt.f32.partialorder %v945_v40, 0.0 }
 0x1fa   :  { %v1004_v43 = vmul.f32 0.01, %v947_v41  ;;  %vm996_vm12 = vcmp.gt.f32.partialorder %v947_v41, 0.0 }
 0x1fb   :  { %v1011_v48 = vsel %vm995_vm11, %v945_v40, %v1003_v42 }
 0x1fc   :  { %v951_v44 = vpop.f32.mrb[2].mxu1  ;;  %v1012_v50 = vsel %vm996_vm12, %v947_v41, %v1004_v43 }
 0x1fd   :  { %vm997_vm13 = vcmp.gt.f32.partialorder %v951_v44, 0.0  ;;  %v1005_v45 = vmul.f32 0.01, %v951_v44  ;;  %v953_v46 = vpop.f32.mrb[3].mxu1 }
 0x1fe   :  { %vm998_vm14 = vcmp.gt.f32.partialorder %v953_v46, 0.0  ;;  %v1006_v47 = vmul.f32 0.01, %v953_v46 }
 0x1ff   :  { %v1013_v49 = vsel %vm997_vm13, %v951_v44, %v1005_v45 }
 0x200   :  { %v1541_v51 = vpack.c.bf16 %v1013_v49, %v1011_v48  ;;  %v1014_v52 = vsel %vm998_vm14, %v953_v46, %v1006_v47  ;;  %v957_v53 = vpop.f32.mrb[4].mxu1 }
 0x201   :  { %v959_v54 = vpop.f32.mrb[5].mxu1  ;;  %v1539_v3 = vpack.c.bf16 %v1014_v52, %v1012_v50  ;;  %v1007_v55 = vmul.f32 0.01, %v957_v53  ;;  %vm999_vm15 = vcmp.gt.f32.partialorder %v957_v53, 0.0 }
 0x202   :  { %v1008_v56 = vmul.f32 0.01, %v959_v54  ;;  %vm1000_vm0 = vcmp.gt.f32.partialorder %v959_v54, 0.0 }
 0x203   :  { %1540 = vmatprep.subr.bf16.mxu1 %v1539_v3  ;;  %v1015_v61 = vsel %vm999_vm15, %v957_v53, %v1007_v55 }
 0x204   :  { %v963_v57 = vpop.f32.mrb[6].mxu1  ;;  %1542 = vmatpush1.bf16.msra.mxu1 %v1541_v51  ;;  %v1016_v63 = vsel %vm1000_vm0, %v959_v54, %v1008_v56 }
 0x205   :  { %vm1001_vm2 = vcmp.gt.f32.partialorder %v963_v57, 0.0  ;;  %v1009_v58 = vmul.f32 0.01, %v963_v57  ;;  %v965_v59 = vpop.f32.mrb[7].mxu1 }
 0x206   :  { %vm1002_vm3 = vcmp.gt.f32.partialorder %v965_v59, 0.0  ;;  %v1010_v60 = vmul.f32 0.01, %v965_v59 }
 0x207   :  { %v1017_v62 = vsel %vm1001_vm2, %v963_v57, %v1009_v58 }
 0x208   :  { %v1545_v0 = vpack.c.bf16 %v1017_v62, %v1015_v61  ;;  %v1018_v2 = vsel %vm1002_vm3, %v965_v59, %v1010_v60 }
 0x209   :  { %v1543_v4 = vpack.c.bf16 %v1018_v2, %v1016_v63 }
 0x20b   :  { %1544 = vmatprep.subr.bf16.mxu1 %v1543_v4 }
 0x20c   :  { %1546 = vmatpush1.bf16.msra.mxu1 %v1545_v0 }
 0x20f   :  { %1408 = vmatmul.mubr.msk.f32.vlgmr.msra.gmra.mrb[8].mxu1 %vm1022_vm4, %v1019_v5 }
 0x2e2   :  { %v1092_v8 = vpop.f32.mrb[8].mxu1 }
 0x2e3   :  { %v1093_v9 = vadd.f32 %v1092_v8, %v1021_v7  ;;  %v1094_v10 = vpop.f32.mrb[9].mxu1 }
 0x2e4   :  { %v1095_v11 = vadd.f32 %v1094_v10, %v1021_v7 }
 0x2e5   :  { %v1409_v12 = vmul.f32 -1.442695, %v1093_v9 }
 0x2e6   :  { %v1410_v13 = vmul.f32 -1.442695, %v1095_v11 }
 0x2e7   :  { %1563 = vpow2.f32 %v1409_v12 }
 0x2e8   :  { %1565 = vpow2.f32 %v1410_v13 }
 0x2f1   :  { %v1564_v14 = vpop.eup %1563 }
 0x2f2   :  { %v1566_v15 = vpop.eup %1565  ;;  %v1103_v16 = vadd.f32 1.0, %v1564_v14 }
 0x2f3   :  { %v1104_v19 = vadd.f32 1.0, %v1566_v15 }
 0x2f4   :  { %1567 = vrcp.f32 %v1103_v16 }
 0x2f5   :  { %1569 = vrcp.f32 %v1104_v19 }
 0x2fe   :  { %v1568_v22 = vpop.eup %1567 }
 0x2ff   :  { %v1570_v23 = vpop.eup %1569 }
 0x300   :  { %v1111_v24 = vcombine.low %v1568_v22, %v1570_v23 }
 0x302   :  { %v1118_v25 = vrot.slane %v1111_v24, %v1117_v17 }
 0x304   :  { %v1125_v26 = vrot.slane %v1118_v25, %v1117_v17 }
 0x306   :  { %1131 = vst.msk [vmem:[#allocation4] sm:$0x3] %vm1129_vm5, %v1125_v26 }
 0x307   :  { %1582 = shalt.err (!%p1579_p4)
}
 0x308   :  { %s1583_s10 = scalar_lea.hbm %s2076_s8, 32 }
 0x309   :  { %p1584_p5 = scmp.ne.s32.totalorder %s2076_s8, %s1583_s10  ;;  %p1587_p6 = scmp.lt.u32.totalorder %s1583_s10, %s2076_s8 }
 0x30b   :  { %p1589_p7 = pnand %p1587_p6, %p1584_p5 }
 0x30d   :  { %1592 = shalt.err (!%p1589_p7)
}
 0x30e   :  { %1141 = dma.vmem_to_hbm [thread:$0]  %s1139_s7, 32, %s2076_s8, [#allocation5]  }
 0x30f   :  { %1593 = dma.done.wait [#allocation5], 32  }
 0x310   :  { %1594 = vsyncadd [#allocation5], 4294967264 }
 0x311   :  { %1145 = vsyncpa [#allocation5], 1 }

</bundles_post_ra>
